<compile_context>
chip_gen: v7x
topology: tpu7x:2x2x1
jax: 0.10.0
libtpu: 0.0.40
codegen_flags: <defaults>
</compile_context>

<pallas_src>
import functools
import math

import jax
import jax.numpy as jnp
from jax.experimental import pallas as pl
from jax.experimental.pallas import tpu as pltpu


def _round_up(x, m):
    return ((x + m - 1) // m) * m


def _to_logits_kernel(x_ref, w_ref, b_ref, o_ref, *, eps):
    # x_ref: (Tr, D) tile of flattened rows.
    x = x_ref[...].astype(jnp.float32)
    mean = jnp.mean(x, axis=-1, keepdims=True)
    var = jnp.mean(jnp.square(x - mean), axis=-1, keepdims=True)
    xhat = (x - mean) * jax.lax.rsqrt(var + eps)                    # (Tr, D) f32

    # Single fused projection: columns are (coord_logits | token_logits),
    # LayerNorm affines already folded into w/b in the wrapper.
    y = jnp.dot(xhat.astype(w_ref.dtype), w_ref[...],
                preferred_element_type=jnp.float32)                 # (Tr, Dout)
    y = y + b_ref[...]                                              # (1, Dout) f32 bias

    o_ref[...] = y.astype(o_ref.dtype)


def to_logits(x, params, *, eps=1e-5, block_rows=256):
    """x: (..., dim) -> (..., coord_dims + dict_size), matching ToLogitsNet."""
    *lead, D = x.shape
    R = int(math.prod(lead)) if lead else 1

    gamma_t = params["token_gamma"].astype(jnp.float32)
    beta_t = params["token_beta"].astype(jnp.float32)
    gamma_c = params["coord_gamma"].astype(jnp.float32)
    beta_c = params["coord_beta"].astype(jnp.float32)
    wt = params["token_w"]            # (D, dict_size)
    wc = params["coord_w"]            # (D, coord_dims)

    # Fold each LayerNorm affine into its linear weight / bias (wrapper-side,
    # one-time).  Column order (coord | token) matches torch.cat order.
    w_c = (gamma_c[:, None] * wc.astype(jnp.float32)).astype(wc.dtype)
    w_t = (gamma_t[:, None] * wt.astype(jnp.float32)).astype(wt.dtype)
    w_cat = jnp.concatenate([w_c, w_t], axis=1)                     # (D, Dout)
    b_c = beta_c @ wc.astype(jnp.float32)                           # (coord_dims,)
    b_t = beta_t @ wt.astype(jnp.float32)                           # (dict_size,)
    b_cat = jnp.concatenate([b_c, b_t])[None, :]                    # (1, Dout) f32
    Dout = w_cat.shape[1]

    # Flatten leading dims into one row axis and tile it.
    x2 = x.reshape(R, D)
    tr = min(block_rows, _round_up(R, 8))                           # multiple of 8
    r_pad = _round_up(R, tr)
    if r_pad != R:
        x2 = jnp.pad(x2, ((0, r_pad - R), (0, 0)))
    grid = (r_pad // tr,)

    kernel = functools.partial(_to_logits_kernel, eps=eps)

    out = pl.pallas_call(
        kernel,
        out_shape=jax.ShapeDtypeStruct((r_pad, Dout), x.dtype),
        grid=grid,
        in_specs=[
            pl.BlockSpec((tr, D), lambda i: (i, 0)),
            pl.BlockSpec((D, Dout), lambda i: (0, 0)),
            pl.BlockSpec((1, Dout), lambda i: (0, 0)),
        ],
        out_specs=pl.BlockSpec((tr, Dout), lambda i: (i, 0)),
        compiler_params=pltpu.CompilerParams(
            dimension_semantics=("parallel",)),
    )(x2, w_cat, b_cat)

    out = out[:R]
    return out.reshape(*lead, Dout)


def to_logits_ref(x, params, *, eps=1e-5):
    """Pure-JAX reference mirroring the PyTorch forward exactly."""
    def layer_norm(v, g, b):
        mean = jnp.mean(v, axis=-1, keepdims=True)
        var = jnp.mean((v - mean) ** 2, axis=-1, keepdims=True)
        return (v - mean) / jnp.sqrt(var + eps) * g + b

    token_logits = layer_norm(x, params["token_gamma"], params["token_beta"]) @ params["token_w"]
    coord_logits = layer_norm(x, params["coord_gamma"], params["coord_beta"]) @ params["coord_w"]
    return jnp.concatenate([coord_logits, token_logits], axis=-1)


if __name__ == "__main__":
    # Small shapes consistent with the module: x is (batch, seq, dim);
    # coord_dims small (trajectory coords), dict_size a small vocab.
    B, N, DIM = 2, 8, 32
    COORD_DIMS, DICT_SIZE = 4, 60

    key = jax.random.PRNGKey(0)
    kx, kgt, kbt, kgc, kbc, kwt, kwc = jax.random.split(key, 7)

    x = jax.random.normal(kx, (B, N, DIM), dtype=jnp.float32)

    def lin(k, fan_in, fan_out):
        bound = 1.0 / jnp.sqrt(fan_in)
        return jax.random.uniform(k, (fan_in, fan_out), jnp.float32, -bound, bound)

    # Module init is gamma=ones / beta=zeros; use perturbed values so the
    # affine-folding path is actually exercised by the correctness check.
    params = {
        "token_gamma": 1.0 + 0.1 * jax.random.normal(kgt, (DIM,), jnp.float32),
        "token_beta": 0.1 * jax.random.normal(kbt, (DIM,), jnp.float32),
        "coord_gamma": 1.0 + 0.1 * jax.random.normal(kgc, (DIM,), jnp.float32),
        "coord_beta": 0.1 * jax.random.normal(kbc, (DIM,), jnp.float32),
        "token_w": lin(kwt, DIM, DICT_SIZE),    # stored (in, out): y = x @ W
        "coord_w": lin(kwc, DIM, COORD_DIMS),
    }

    out = to_logits(x, params)
    out = jax.block_until_ready(out)

    ref = to_logits_ref(x, params)
    assert out.shape == (B, N, COORD_DIMS + DICT_SIZE), out.shape
    assert jnp.allclose(out, ref, atol=1e-4, rtol=1e-4), "mismatch vs reference"

    print("KERNEL_OK")
</pallas_src>

<mosaic_0001>
module attributes {stable_mosaic.version = 11 : i64} {
  func.func @_to_logits_kernel(%arg0: i32, %arg1: memref<16x32xf32, #tpu.memory_space<vmem>>, %arg2: memref<32x64xf32, #tpu.memory_space<vmem>>, %arg3: memref<1x64xf32, #tpu.memory_space<vmem>>, %arg4: memref<16x64xf32, #tpu.memory_space<vmem>>) attributes {dimension_semantics = [#tpu.dimension_semantics<parallel>], iteration_bounds = array<i64: 1>, scalar_prefetch = 0 : i64, scratch_operands = 0 : i64, tpu.core_type = #tpu.core_type<tc>, window_params = [{transform_indices = @transform_0, window_bounds = array<i64: 16, 32>}, {pipeline_mode = #tpu.pipeline_mode<synchronous>, transform_indices = @transform_1, window_bounds = array<i64: 32, 64>}, {pipeline_mode = #tpu.pipeline_mode<synchronous>, transform_indices = @transform_2, window_bounds = array<i64: 1, 64>}, {transform_indices = @transform_3, window_bounds = array<i64: 16, 64>}]} {
    %c0 = arith.constant 0 : index
    %c0_0 = arith.constant 0 : index
    %0 = vector.load %arg1[%c0, %c0_0] : memref<16x32xf32, #tpu.memory_space<vmem>>, vector<16x32xf32>
    %cst = arith.constant dense<0.000000e+00> : vector<16xf32>
    %1 = vector.multi_reduction <add>, %0, %cst [1] : vector<16x32xf32> to vector<16xf32>
    %2 = vector.shape_cast %1 : vector<16xf32> to vector<16x1xf32>
    %cst_1 = arith.constant 3.200000e+01 : f32
    %3 = vector.broadcast %cst_1 : f32 to vector<16x1xf32>
    %4 = arith.divf %2, %3 : vector<16x1xf32>
    %5 = vector.broadcast %4 : vector<16x1xf32> to vector<16x32xf32>
    %6 = arith.subf %0, %5 : vector<16x32xf32>
    %7 = arith.mulf %6, %6 : vector<16x32xf32>
    %cst_2 = arith.constant dense<0.000000e+00> : vector<16xf32>
    %8 = vector.multi_reduction <add>, %7, %cst_2 [1] : vector<16x32xf32> to vector<16xf32>
    %9 = vector.shape_cast %8 : vector<16xf32> to vector<16x1xf32>
    %cst_3 = arith.constant 3.200000e+01 : f32
    %10 = vector.broadcast %cst_3 : f32 to vector<16x1xf32>
    %11 = arith.divf %9, %10 : vector<16x1xf32>
    %12 = vector.broadcast %4 : vector<16x1xf32> to vector<16x32xf32>
    %13 = arith.subf %0, %12 : vector<16x32xf32>
    %cst_4 = arith.constant 9.99999974E-6 : f32
    %14 = vector.broadcast %cst_4 : f32 to vector<16x1xf32>
    %15 = arith.addf %11, %14 : vector<16x1xf32>
    %16 = math.rsqrt %15 : vector<16x1xf32>
    %17 = vector.broadcast %16 : vector<16x1xf32> to vector<16x32xf32>
    %18 = arith.mulf %13, %17 : vector<16x32xf32>
    %c0_5 = arith.constant 0 : index
    %c0_6 = arith.constant 0 : index
    %19 = vector.load %arg2[%c0_5, %c0_6] : memref<32x64xf32, #tpu.memory_space<vmem>>, vector<32x64xf32>
    %cst_7 = arith.constant dense<0.000000e+00> : vector<16x64xf32>
    %20 = tpu.matmul %18, %19, %cst_7 {dimension_numbers = #tpu.dot_dimension_numbers<[1], [0], [0], [1], [0, 0, 1, 1], [], []>} : vector<16x32xf32>, vector<32x64xf32>, vector<16x64xf32> -> vector<16x64xf32>
    %c0_8 = arith.constant 0 : index
    %c0_9 = arith.constant 0 : index
    %21 = vector.load %arg3[%c0_8, %c0_9] : memref<1x64xf32, #tpu.memory_space<vmem>>, vector<1x64xf32>
    %22 = vector.broadcast %21 : vector<1x64xf32> to vector<16x64xf32>
    %23 = arith.addf %20, %22 : vector<16x64xf32>
    %c0_10 = arith.constant 0 : index
    %c0_11 = arith.constant 0 : index
    %24 = vector.load %arg4[%c0_10, %c0_11] : memref<16x64xf32, #tpu.memory_space<vmem>>, vector<16x64xf32>
    tpu.vector_store %arg4[%c0_10, %c0_11], %23 {strides = array<i32>} : memref<16x64xf32, #tpu.memory_space<vmem>>, vector<16x64xf32>,
    return
  }
  func.func @transform_0(%arg0: i32) -> (i32, i32) {
    %c0_i32 = arith.constant 0 : i32
    %c0_i32_0 = arith.constant 0 : i32
    return %arg0, %c0_i32 : i32, i32
  }
  func.func @transform_1(%arg0: i32) -> (i32, i32) {
    %c0_i32 = arith.constant 0 : i32
    %c0_i32_0 = arith.constant 0 : i32
    %c0_i32_1 = arith.constant 0 : i32
    return %c0_i32, %c0_i32_0 : i32, i32
  }
  func.func @transform_2(%arg0: i32) -> (i32, i32) {
    %c0_i32 = arith.constant 0 : i32
    %c0_i32_0 = arith.constant 0 : i32
    %c0_i32_1 = arith.constant 0 : i32
    return %c0_i32, %c0_i32_0 : i32, i32
  }
  func.func @transform_3(%arg0: i32) -> (i32, i32) {
    %c0_i32 = arith.constant 0 : i32
    %c0_i32_0 = arith.constant 0 : i32
    return %arg0, %c0_i32 : i32, i32
  }
}

</mosaic_0001>

<bundles_post_ra>
// kernel: tpu_custom_call.1
= control target key start
LH: loop header
LB: loop body
LE: loop exit
PB: predicated region body
PF: predicated region fallthrough
CT: control target
= control target key end

     0   :  { %8 = vsyncpa [#allocation3], 0  ;;  %s374_s0 = inlined_call_operand.hbm [shape: f32[16,32], index: 0, kind: input, shape index: {}]   ;;  %s375_s1 = inlined_call_operand.hbm [shape: f32[32,64], index: 1, kind: input, shape index: {}]   ;;  %s376_s2 = inlined_call_operand.vmem [shape: f32[1,64], index: 2, kind: input, shape index: {}]   ;;  %s377_s3 = inlined_call_operand.hbm [shape: f32[16,64], index: 3, kind: output, shape index: {}]  }
   0x1   :  { %9 = vsyncpa [#allocation6], 0 }
   0x2   :  { %10 = vsyncpa [#allocation4], 0  ;;  %s295_s12 = smov [#allocation2]   ;;  %s223_s16 = scalar_lea.hbm %s374_s0, 256 }
   0x3   :  { %s16_s13 = sshll.u32 %s295_s12, 4  ;;  %p224_p0 = scmp.ne.s32.totalorder %s374_s0, %s223_s16  ;;  %s17_s13 = int_to_ptr.vmem [resolvable:$true] %s16_s13 }
   0x4   :  { %p227_p1 = scmp.lt.u32.totalorder %s223_s16, %s374_s0 }
   0x6   :  { %p229_p2 = pnand %p227_p1, %p224_p0 }
   0x8   :  { %232 = shalt.err (!%p229_p2)
}
   0x9   :  { %s233_s21 = scalar_lea.vmem %s17_s13, 256  ;;  %p238_p4 = scmp.lt.s32.totalorder %s17_s13, %s17_s13 }
   0xa   :  { %p234_p3 = scmp.ne.s32.totalorder %s17_s13, %s233_s21  ;;  %p239_p5 = scmp.lt.s32.totalorder %s233_s21, %s233_s21 }
   0xc   :  { %p240_p6 = por %p239_p5, %p238_p4 }
   0xe   :  { %p241_p7 = pnand %p240_p6, %p234_p3 }
  0x10   :  { %244 = shalt.err (!%p241_p7)
}
  0x11   :  { %s296_s22 = smov 128   ;;  %s297_s23 = smov 8  }
  0x12   :  { %22 = dma.hbm_to_vmem [thread:$0]  %s374_s0, 256, %s17_s13, [#allocation3], %s296_s22, %s296_s22, %s297_s23  }
  0x13   :  { %s298_s26 = smov [#allocation5]   ;;  %s245_s30 = scalar_lea.hbm %s375_s1, 512 }
  0x14   :  { %s28_s27 = sshll.u32 %s298_s26, 4  ;;  %p246_p8 = scmp.ne.s32.totalorder %s375_s1, %s245_s30  ;;  %s29_s27 = int_to_ptr.vmem [resolvable:$true] %s28_s27 }
  0x15   :  { %p249_p9 = scmp.lt.u32.totalorder %s245_s30, %s375_s1 }
  0x17   :  { %p251_p10 = pnand %p249_p9, %p246_p8 }
  0x19   :  { %254 = shalt.err (!%p251_p10)
}
  0x1a   :  { %s255_s8 = scalar_lea.vmem %s29_s27, 512  ;;  %p260_p12 = scmp.lt.s32.totalorder %s29_s27, %s29_s27 }
  0x1b   :  { %p256_p11 = scmp.ne.s32.totalorder %s29_s27, %s255_s8  ;;  %p261_p13 = scmp.lt.s32.totalorder %s255_s8, %s255_s8 }
  0x1d   :  { %p262_p0 = por %p261_p13, %p260_p12 }
  0x1f   :  { %p263_p1 = pnand %p262_p0, %p256_p11 }
  0x21   :  { %266 = shalt.err (!%p263_p1)
}
  0x22   :  { %34 = dma.hbm_to_vmem [thread:$0]  %s375_s1, 512, %s29_s27, [#allocation6], %s296_s22, %s296_s22, %s297_s23  }
  0x23   :  { %289 = dma.done.wait [#allocation3], 256  }
  0x24   :  { %290 = vsyncadd [#allocation3], 4294967040 }
  0x25   :  { %291 = dma.done.wait [#allocation6], 512  }
  0x26   :  { %292 = vsyncadd [#allocation6], 4294966784  ;;  %vm45_vm0 = vcmask 261120   ;;  %v43_v0 = vld [vmem:[#allocation2] sm:$0xff]  ;;  %v44_v1 = vld [vmem:[#allocation2 + $0x8] sm:$0xff]  ;;  %s299_s11 = smov [#allocation7]  }
  0x27   :  { %v46_v2 = vsel %vm45_vm0, %v43_v0, 0.0  ;;  %v49_v3 = vsel %vm45_vm0, %v44_v1, 0.0  ;;  %v73_v14 = vld [vmem:[#allocation5] sm:$0xff]  ;;  %v74_v15 = vld [vmem:[#allocation5 + $0x8] sm:$0xff]  ;;  %v75_v16 = vld [vmem:[#allocation5 + $0x10] sm:$0xff]  ;;  %s173_s12 = sshll.u32 %s299_s11, 4  ;;  %s174_s12 = int_to_ptr.vmem [resolvable:$true] %s173_s12 }
  0x28   :  { %47 = vadd.xlane.f32.xlu0 %v46_v2  ;;  %v206_v17 = vpack.c.bf16 %v74_v15, %v73_v14  ;;  %v76_v18 = vld [vmem:[#allocation5 + $0x18] sm:$0xff]  ;;  %v186_v30 = vld [vmem:[%s376_s2] ss:$0 sm:$0xff]  ;;  %vm165_vm1 = vcmask 523264   ;;  %s267_s13 = scalar_lea.vmem %s174_s12, 256  ;;  %p272_p3 = scmp.lt.s32.totalorder %s174_s12, %s174_s12 }
  0x29   :  { %v210_v19 = vpack.c.bf16 %v76_v18, %v75_v16  ;;  %p268_p2 = scmp.ne.s32.totalorder %s174_s12, %s267_s13  ;;  %p273_p4 = scmp.lt.s32.totalorder %s267_s13, %s267_s13 }
  0x2a   :  { %207 = vmatprep.subr.bf16.mxu0 %v206_v17 }
  0x2b   :  { %209 = vmatpush3.bf16.msra.mxu0 %v206_v17  ;;  %p274_p5 = por %p273_p4, %p272_p3 }
  0x2c   :  { %50 = vadd.xlane.f32.xlu0 %v49_v3  ;;  %211 = vmatprep.subr.bf16.mxu0 %v210_v19 }
  0x2d   :  { %p275_p6 = pnand %p274_p5, %p268_p2 }
  0x2f   :  { %213 = vmatpush3.bf16.msra.mxu0 %v210_v19 }
  0xb5   :  { %v48_v4 = vpop.xlane.xlu0 %47 }
  0xb6   :  { %v53_v5 = vmul.f32 0.03125, %v48_v4 }
  0xb8   :  { %v55_v6 = vsub.f32 %v43_v0, %v53_v5 }
  0xb9   :  { %v51_v7 = vpop.xlane.xlu0 %50 }
  0xba   :  { %v54_v8 = vmul.f32 0.03125, %v51_v7  ;;  %v57_v9 = vmul.f32 %v55_v6, %v55_v6 }
  0xbc   :  { %v56_v10 = vsub.f32 %v44_v1, %v54_v8  ;;  %v59_v11 = vsel %vm45_vm0, %v57_v9, 0.0 }
  0xbd   :  { %60 = vadd.xlane.f32.xlu1 %v59_v11 }
  0xbe   :  { %v58_v12 = vmul.f32 %v56_v10, %v56_v10 }
  0xc0   :  { %v62_v13 = vsel %vm45_vm0, %v58_v12, 0.0 }
  0xc1   :  { %63 = vadd.xlane.f32.xlu1 %v62_v13 }
 0x14a   :  { %v61_v20 = vpop.xlane.xlu1 %60 }
 0x14b   :  { %v65_v21 = vmul.f32 0.03125, %v61_v20 }
 0x14d   :  { %v67_v22 = vadd.f32 1e-05, %v65_v21 }
 0x14e   :  { %v64_v23 = vpop.xlane.xlu1 %63 }
 0x14f   :  { %219 = vrsqrt.f32 %v67_v22  ;;  %v66_v24 = vmul.f32 0.03125, %v64_v23 }
 0x151   :  { %v68_v25 = vadd.f32 1e-05, %v66_v24 }
 0x153   :  { %221 = vrsqrt.f32 %v68_v25 }
 0x159   :  { %v220_v26 = vpop.eup %219 }
 0x15a   :  { %v71_v27 = vmul.f32 %v220_v26, %v55_v6 }
 0x15c   :  { %203 = vmatprep.mubr.msk.f32.mxu0 %vm45_vm0, %v71_v27 }
 0x15d   :  { %v222_v28 = vpop.eup %221 }
 0x15e   :  { %v72_v29 = vmul.f32 %v222_v28, %v56_v10 }
 0x160   :  { %204 = vmatmul.mubr.msk.f32.vlgmr.msra.gmra.mrb[0].mxu0 %vm45_vm0, %v72_v29 }
 0x233   :  { %v205_v31 = vpop.f32.mrb[0].mxu0 }
 0x234   :  { %v162_v32 = vadd.f32 %v205_v31, %v186_v30  ;;  %v156_v33 = vpop.f32.mrb[1].mxu0 }
 0x235   :  { %v157_v34 = vadd.f32 %v186_v30, %v156_v33 }
 0x236   :  { %167 = vst.msk [vmem:[#allocation7 + $0x8] sm:$0xff] %vm165_vm1, %v162_v32 }
 0x237   :  { %166 = vst.msk [vmem:[#allocation7] sm:$0xff] %vm165_vm1, %v157_v34 }
 0x238   :  { %278 = shalt.err (!%p275_p6)
}
 0x239   :  { %s279_s2 = scalar_lea.hbm %s377_s3, 256 }
 0x23a   :  { %p280_p7 = scmp.ne.s32.totalorder %s377_s3, %s279_s2  ;;  %p283_p8 = scmp.lt.u32.totalorder %s279_s2, %s377_s3 }
 0x23c   :  { %p285_p9 = pnand %p283_p8, %p280_p7 }
 0x23e   :  { %288 = shalt.err (!%p285_p9)
}
 0x23f   :  { %179 = dma.vmem_to_hbm [thread:$0]  %s174_s12, 256, %s377_s3, [#allocation4], %s296_s22, %s296_s22, %s297_s23  }
 0x240   :  { %293 = dma.done.wait [#allocation4], 256  }
 0x241   :  { %294 = vsyncadd [#allocation4], 4294967040 }
 0x242   :  { %183 = vsyncpa [#allocation3], 1 }
 0x243   :  { %184 = vsyncpa [#allocation6], 1 }
 0x244   :  { %185 = vsyncpa [#allocation4], 1 }

</bundles_post_ra>
